<compile_context>
chip_gen: v7x
topology: tpu7x:2x2x1
jax: 0.10.0
libtpu: 0.0.40
codegen_flags: <defaults>
</compile_context>

<pallas_src>
from functools import partial

import jax
import jax.numpy as jnp
from jax.experimental import pallas as pl
from jax.experimental.pallas import tpu as pltpu

_LANE = 128


def conv_bn_act_kernel(w_ref, b_ref, x_ref, o_ref):
    # w_ref: (C2, Cin)  b_ref: (C2, 1)  x_ref: (Cin, TM)  o_ref: (C2, TM)
    acc = jnp.dot(w_ref[...], x_ref[...], preferred_element_type=jnp.float32)
    y = acc + b_ref[...]                                   # folded BN bias
    o_ref[...] = jnp.where(y > 0, y, 0.1 * y).astype(o_ref.dtype)  # LeakyReLU(0.1)


def _pick_tile_m(n, hw, cin, c2, act_bytes, vmem_budget=8 << 20):
    """Largest lane tile fitting the VMEM budget (double-buffered in + f32 out)."""
    if hw <= _LANE:
        return hw                      # full dim is always a legal block size
    per_lane = 2 * (cin * act_bytes + c2 * 4)   # 2x-buffered input + output bytes/lane
    tm = (vmem_budget // per_lane) // _LANE * _LANE
    tm = int(max(_LANE, min(tm, 8192)))
    tm = min(tm, (hw // _LANE) * _LANE)         # <= hw; last block gets masked
    if n == 1:
        # v7x has 2 TensorCores: keep at least 2 grid steps on the M axis.
        tm = min(tm, max(_LANE, pl.cdiv(pl.cdiv(hw, _LANE), 2) * _LANE))
    return tm


def conv1x1_bn_leakyrelu(z, conv_w, bn_gamma, bn_beta, bn_mean, bn_var,
                         bn_eps=1e-5, act_dtype=jnp.float32):
    """The `Conv` module (1x1 conv, no bias) + BN (eval) + LeakyReLU(0.1).

    z: (N, Cin, Ho, Wo) NCHW float32.  conv_w: (C2, Cin, 1, 1).
    Returns (N, C2, Ho, Wo) float32.
    """
    N, Cin, Ho, Wo = z.shape
    C2 = conv_w.shape[0]
    HW = Ho * Wo

    # Fold BN (inference) into the conv weight / per-channel bias.
    scale = bn_gamma / jnp.sqrt(bn_var + bn_eps)                        # (C2,)
    w_mat = (conv_w[:, :, 0, 0] * scale[:, None]).astype(act_dtype)     # (C2, Cin)
    bias = (bn_beta - bn_mean * scale).reshape(C2, 1).astype(jnp.float32)

    # Lane-dense, transpose-free view: channels on sublanes, spatial on lanes.
    z_flat = z.reshape(N, Cin, HW).astype(act_dtype)

    act_bytes = jnp.dtype(act_dtype).itemsize
    TM = _pick_tile_m(N, HW, Cin, C2, act_bytes)
    m_tiles = pl.cdiv(HW, TM)

    # Explicit VMEM limit with headroom.
    need = 2 * TM * (Cin * act_bytes + C2 * 4) + C2 * (Cin * act_bytes + 4)
    vmem_limit = int(min(max(4 * need, 8 << 20), 32 << 20))

    out_flat = pl.pallas_call(
        conv_bn_act_kernel,
        out_shape=jax.ShapeDtypeStruct((N, C2, HW), jnp.float32),
        grid_spec=pltpu.PrefetchScalarGridSpec(
            num_scalar_prefetch=0,
            grid=(N, m_tiles),
            in_specs=[
                pl.BlockSpec((C2, Cin), lambda n, m: (0, 0)),   # weight (resident)
                pl.BlockSpec((C2, 1), lambda n, m: (0, 0)),     # bias (resident)
                pl.BlockSpec((None, Cin, TM), lambda n, m: (n, 0, m)),
            ],
            out_specs=pl.BlockSpec((None, C2, TM), lambda n, m: (n, 0, m)),
        ),
        compiler_params=pltpu.CompilerParams(
            dimension_semantics=("parallel", "parallel"),
            vmem_limit_bytes=vmem_limit,
        ),
    )(w_mat, bias, z_flat)

    return out_flat.reshape(N, C2, Ho, Wo)


def focus_forward(x, conv_w, bn_gamma, bn_beta, bn_mean, bn_var, bn_eps=1e-5,
                  act_dtype=jnp.float32):
    """Focus context: space-to-depth then Conv-BN-LeakyReLU.

    x: (N, C1, H, W) float32.  conv_w: (C2, 4*C1, 1, 1).  Out: (N, C2, H//2, W//2).
    """
    N, C1, H, W = x.shape
    Ho, Wo = H // 2, W // 2
    # Space-to-depth in ONE reshape+transpose pass.  Resulting channel order
    # (chunk = w_off*2 + h_off major, c1 minor) equals
    # torch.cat([x[::2,::2], x[1::2,::2], x[::2,1::2], x[1::2,1::2]], dim=1),
    # so no weight permutation is required.
    z = x.reshape(N, C1, Ho, 2, Wo, 2)
    z = jnp.transpose(z, (0, 5, 3, 1, 2, 4)).reshape(N, 4 * C1, Ho, Wo)
    return conv1x1_bn_leakyrelu(z, conv_w, bn_gamma, bn_beta, bn_mean, bn_var,
                                bn_eps=bn_eps, act_dtype=act_dtype)


def _reference(x, conv_w, gamma, beta, mean, var, eps=1e-5):
    z = jnp.concatenate(
        [x[..., ::2, ::2], x[..., 1::2, ::2], x[..., ::2, 1::2], x[..., 1::2, 1::2]],
        axis=1,
    )
    y = jax.lax.conv_general_dilated(
        z, conv_w, window_strides=(1, 1), padding="VALID",
        dimension_numbers=("NCHW", "OIHW", "NCHW"),
    )
    y = (y - mean[None, :, None, None]) / jnp.sqrt(var[None, :, None, None] + eps)
    y = y * gamma[None, :, None, None] + beta[None, :, None, None]
    return jnp.where(y > 0, y, 0.1 * y)


if __name__ == "__main__":
    key = jax.random.PRNGKey(0)
    k_x, k_w, k_g, k_b, k_m, k_v = jax.random.split(key, 6)

    N, C1, H, W = 2, 4, 16, 16
    C2 = 8

    x = jax.random.normal(k_x, (N, C1, H, W), dtype=jnp.float32)
    conv_w = jax.random.normal(k_w, (C2, 4 * C1, 1, 1), dtype=jnp.float32) * 0.1
    bn_gamma = 1.0 + 0.1 * jax.random.normal(k_g, (C2,), dtype=jnp.float32)
    bn_beta = 0.1 * jax.random.normal(k_b, (C2,), dtype=jnp.float32)
    bn_mean = 0.05 * jax.random.normal(k_m, (C2,), dtype=jnp.float32)
    bn_var = 1.0 + jnp.abs(0.1 * jax.random.normal(k_v, (C2,), dtype=jnp.float32))

    fwd_f32 = jax.jit(focus_forward)
    fwd_bf16 = jax.jit(partial(focus_forward, act_dtype=jnp.bfloat16))

    # 1) f32 path, small aligned shape.
    out = jax.block_until_ready(fwd_f32(x, conv_w, bn_gamma, bn_beta, bn_mean, bn_var))
    ref = _reference(x, conv_w, bn_gamma, bn_beta, bn_mean, bn_var)
    assert out.shape == (N, C2, H // 2, W // 2)
    assert jnp.allclose(out, ref, atol=1e-4, rtol=1e-4)

    # 2) Non-128-aligned spatial size + odd channel counts (exercises the
    #    cdiv grid / masked boundary tile path that replaced the old assert).
    N2, C1b, H2, W2, C2b = 1, 3, 36, 36, 6
    kx2, kw2 = jax.random.split(k_x)
    x2 = jax.random.normal(kx2, (N2, C1b, H2, W2), dtype=jnp.float32)
    w2 = jax.random.normal(kw2, (C2b, 4 * C1b, 1, 1), dtype=jnp.float32) * 0.1
    g2 = 1.0 + 0.1 * jax.random.normal(k_g, (C2b,), dtype=jnp.float32)
    b2 = 0.1 * jax.random.normal(k_b, (C2b,), dtype=jnp.float32)
    m2 = 0.05 * jax.random.normal(k_m, (C2b,), dtype=jnp.float32)
    v2 = 1.0 + jnp.abs(0.1 * jax.random.normal(k_v, (C2b,), dtype=jnp.float32))
    out2 = jax.block_until_ready(fwd_f32(x2, w2, g2, b2, m2, v2))
    ref2 = _reference(x2, w2, g2, b2, m2, v2)
    assert out2.shape == (N2, C2b, H2 // 2, W2 // 2)
    assert jnp.allclose(out2, ref2, atol=1e-4, rtol=1e-4)

    # 3) bf16 activation stream (v6e/v7x byte-reduction option), f32 accumulate
    #    and f32 epilogue -> looser tolerance vs the f32 reference.
    out_bf16 = jax.block_until_ready(
        fwd_bf16(x, conv_w, bn_gamma, bn_beta, bn_mean, bn_var))
    assert jnp.allclose(out_bf16, ref, atol=5e-2, rtol=5e-2)

    print("KERNEL_OK")
</pallas_src>

<mosaic_0001>
module attributes {stable_mosaic.version = 11 : i64} {
  func.func @conv_bn_act_kernel(%arg0: i32, %arg1: i32, %arg2: memref<8x16xf32, #tpu.memory_space<vmem>>, %arg3: memref<8x1xf32, #tpu.memory_space<vmem>>, %arg4: memref<1x16x64xf32, #tpu.memory_space<vmem>>, %arg5: memref<1x8x64xf32, #tpu.memory_space<vmem>>) attributes {dimension_semantics = [#tpu.dimension_semantics<parallel>, #tpu.dimension_semantics<parallel>], iteration_bounds = array<i64: 2, 1>, scalar_prefetch = 0 : i64, scratch_operands = 0 : i64, tpu.core_type = #tpu.core_type<tc>, window_params = [{pipeline_mode = #tpu.pipeline_mode<synchronous>, transform_indices = @transform_0, window_bounds = array<i64: 8, 16>}, {pipeline_mode = #tpu.pipeline_mode<synchronous>, transform_indices = @transform_1, window_bounds = array<i64: 8, 1>}, {transform_indices = @transform_2, window_bounds = array<i64: 1, 16, 64>}, {transform_indices = @transform_3, window_bounds = array<i64: 1, 8, 64>}]} {
    %c0 = arith.constant 0 : index
    %c0_0 = arith.constant 0 : index
    %0 = vector.load %arg2[%c0, %c0_0] : memref<8x16xf32, #tpu.memory_space<vmem>>, vector<8x16xf32>
    %c0_1 = arith.constant 0 : index
    %c0_2 = arith.constant 0 : index
    %c0_3 = arith.constant 0 : index
    %1 = vector.load %arg4[%c0_1, %c0_2, %c0_3] : memref<1x16x64xf32, #tpu.memory_space<vmem>>, vector<1x16x64xf32>
    %2 = vector.shape_cast %1 : vector<1x16x64xf32> to vector<16x64xf32>
    %cst = arith.constant dense<0.000000e+00> : vector<8x64xf32>
    %3 = tpu.matmul %0, %2, %cst {dimension_numbers = #tpu.dot_dimension_numbers<[1], [0], [0], [1], [0, 0, 1, 1], [], []>} : vector<8x16xf32>, vector<16x64xf32>, vector<8x64xf32> -> vector<8x64xf32>
    %c0_4 = arith.constant 0 : index
    %c0_5 = arith.constant 0 : index
    %4 = vector.load %arg3[%c0_4, %c0_5] : memref<8x1xf32, #tpu.memory_space<vmem>>, vector<8x1xf32>
    %5 = vector.broadcast %4 : vector<8x1xf32> to vector<8x64xf32>
    %6 = arith.addf %3, %5 : vector<8x64xf32>
    %cst_6 = arith.constant 0.000000e+00 : f32
    %7 = vector.broadcast %cst_6 : f32 to vector<8x64xf32>
    %8 = arith.cmpf ogt, %6, %7 : vector<8x64xf32>
    %cst_7 = arith.constant 1.000000e-01 : f32
    %9 = vector.broadcast %cst_7 : f32 to vector<8x64xf32>
    %10 = arith.mulf %9, %6 : vector<8x64xf32>
    %11 = arith.select %8, %6, %10 : vector<8x64xi1>, vector<8x64xf32>
    %c0_8 = arith.constant 0 : index
    %c0_9 = arith.constant 0 : index
    %c0_10 = arith.constant 0 : index
    %12 = vector.load %arg5[%c0_8, %c0_9, %c0_10] : memref<1x8x64xf32, #tpu.memory_space<vmem>>, vector<1x8x64xf32>
    %13 = vector.shape_cast %12 : vector<1x8x64xf32> to vector<8x64xf32>
    %14 = vector.shape_cast %11 : vector<8x64xf32> to vector<1x8x64xf32>
    tpu.vector_store %arg5[%c0_8, %c0_9, %c0_10], %14 {strides = array<i32>} : memref<1x8x64xf32, #tpu.memory_space<vmem>>, vector<1x8x64xf32>,
    return
  }
  func.func @transform_0(%arg0: i32, %arg1: i32) -> (i32, i32) {
    %c0_i32 = arith.constant 0 : i32
    %c0_i32_0 = arith.constant 0 : i32
    %c0_i32_1 = arith.constant 0 : i32
    return %c0_i32, %c0_i32_0 : i32, i32
  }
  func.func @transform_1(%arg0: i32, %arg1: i32) -> (i32, i32) {
    %c0_i32 = arith.constant 0 : i32
    %c0_i32_0 = arith.constant 0 : i32
    %c0_i32_1 = arith.constant 0 : i32
    return %c0_i32, %c0_i32_0 : i32, i32
  }
  func.func @transform_2(%arg0: i32, %arg1: i32) -> (i32, i32, i32) {
    %c0_i32 = arith.constant 0 : i32
    %c0_i32_0 = arith.constant 0 : i32
    return %arg0, %c0_i32, %arg1 : i32, i32, i32
  }
  func.func @transform_3(%arg0: i32, %arg1: i32) -> (i32, i32, i32) {
    %c0_i32 = arith.constant 0 : i32
    %c0_i32_0 = arith.constant 0 : i32
    return %arg0, %c0_i32, %arg1 : i32, i32, i32
  }
}

</mosaic_0001>

<bundles_post_ra>
// kernel: focus_forward.1
= control target key start
LH: loop header
LB: loop body
LE: loop exit
PB: predicated region body
PF: predicated region fallthrough
CT: control target
= control target key end

     0   :  { %s467_s12 = smov 0   ;;  %s469_s13 = smov 0   ;;  %s506_s0 = inlined_call_operand.vmem [shape: f32[8,16], index: 0, kind: input, shape index: {}]   ;;  %s507_s1 = inlined_call_operand.vmem [shape: f32[8,1], index: 1, kind: input, shape index: {}]   ;;  %s508_s2 = inlined_call_operand.vmem [shape: f32[2,16,64], index: 2, kind: input, shape index: {}]   ;;  %s509_s3 = inlined_call_operand.vmem [shape: f32[2,8,64], index: 3, kind: output, shape index: {}]  }
   0x1   :  { %s471_s14 = smov 0  }
   0x2 LB: > { %s25_s15 = sadd.s32 1, %s437_s13  ;;  %p369_p0 = scmp.ge.s32.totalorder %s441_s14, 1  ;;  %s441_s14 = sphi %s471_s14, %s13_s14   ;;  %s437_s13 = sphi %s469_s13, %s511_s13   ;;  %s433_s12 = sphi %s467_s12, %s510_s12  }
   0x3   : > { %p27_p1 = scmp.ge.s32.totalorder %s25_s15, 2  ;;  %p156_p2 = scmp.lt.s32.totalorder %s441_s14, 3 }
   0x5   : > { %s513_s15 = smov (%p27_p1, %s25_s15), 0  ;;  %p157_p3 = pnand %p369_p0, %p156_p2 }
   0x6   : > { %p185_p4 = scmp.lt.s32.totalorder (!%p157_p3), %s433_s12, 1  ;;  %v443_v0 = vmov (!%p157_p3), 0.0|0.0   ;;  %vm444_vm0 = vmmov (!%p157_p3), 0   ;;  %v445_v1 = vmov (!%p157_p3), 0.0   ;;  %v203_v2 = vld [vmem:[%s507_s1] sm:$0xff] (!%p157_p3)  ;;  %v446_v3 = vmov (!%p157_p3), 0  }
   0x7   : > { %160 = sbr.rel (%p157_p3) target bundleno = 241 (0xf1), region = 32  ;;  %387 = vmatprep.subr.bf16.mxu0 (!%p157_p3), %v443_v0  ;;  %384 = vmatprep.mubr.msk.f32.mxu0 (!%p157_p3), %vm444_vm0, %v445_v1  ;;  %v200_v7 = vld [vmem:[%s506_s0] sm:$0xff] (!%p157_p3)  ;;  %vm209_vm1 = vcmask (!%p157_p3), 130048   ;;  %vm286_vm3 = vcmask (!%p157_p3), 523264  }
   0x8   : > { %418 = vset.pattern.permute.xlu0 (!%p157_p3), %v446_v3 }
   0x9   : > { %206 = vperm.xlu0 (!%p157_p3), %418, %v203_v2  }
   0xe   : > { %s515_s12 = smov (!%p185_p4, %s433_s12), 1 }
   0xf   : > { %s376_s18 = sshll.u32 %s515_s12, 4  ;;  %s372_s24 = sshll.u32 %s515_s12, 3 }
  0x10   : > { %s192_s21 = scalar_lea.vmem %s508_s2, %s376_s18  ;;  %s199_s27 = scalar_lea.vmem %s509_s3, %s372_s24 }
  0x11   : > { %v201_v4 = vld [vmem:[%s192_s21] sm:$0xff]  ;;  %v202_v5 = vld [vmem:[%s192_s21 + $0x8] sm:$0xff] }
  0x12   : > { %v388_v6 = vpack.c.bf16 %v202_v5, %v201_v4 }
  0x14   : > { %389 = vmatpush3.bf16.msra.mxu0 %v388_v6 }
  0x17   : > { %385 = vmatmul.mubr.msk.f32.vlgmr.msra.gmra.mrb[0].mxu0 %vm209_vm1, %v200_v7 }
  0x88   : > { %v207_v8 = vpop.permute.xlu0 %206 }
  0xea   : > { %v279_v9 = vpop.f32.mrb[0].mxu0 }
  0xeb   : > { %v280_v10 = vadd.f32 %v279_v9, %v207_v8  ;;  %v386_v11 = vpop.f32.mrb[1].mxu0 }
  0xed   : > { %vm283_vm2 = vcmp.gt.f32.partialorder %v280_v10, 0.0  ;;  %v284_v12 = vmul.f32 0.1, %v280_v10 }
  0xef   : > { %v285_v13 = vsel %vm283_vm2, %v280_v10, %v284_v12 }
  0xf0   : > { %287 = vst.msk [vmem:[%s199_s27] sm:$0xff] %vm286_vm3, %v285_v13 }
  0xf1 PF: > { %s13_s14 = sadd.s32 1, %s441_s14   ;;  %s510_s12 = smov %s437_s13 }
  0xf2   : > { %p10_p5 = scmp.ge.s32.totalorder %s13_s14, 4   ;;  %s511_s13 = smov %s513_s15 }
  0xf4   :  { %12 = sbr.rel (!%p10_p5) target bundleno = 2 (0x2), region = 62 }

</bundles_post_ra>
